<compile_context>
chip_gen: v6e
topology: v6e:2x2x1
jax: 0.10.0
libtpu: 0.0.40
codegen_flags: <defaults>
</compile_context>

<pallas_src>
import jax
import jax.numpy as jnp
from jax import lax
from jax.experimental import pallas as pl
from jax.experimental.pallas import tpu as pltpu

_PACK = 8  # logical rows packed per lane-row


def _round_up(x, m):
    return ((x + m - 1) // m) * m


def _critic_kernel(xp_ref, w1_ref, b1_ref, w2_ref, b2_ref, w3t_ref, b3_ref, out_ref):
    # xp_ref: (tm_p, P*D) bf16 packed rows; weights bf16; biases f32; out f32.
    xp = xp_ref[...]
    # Layer 1: block-diagonal Linear(D, fc1) + Tanh (bf16 MXU, f32 accumulate)
    h1 = jnp.dot(xp, w1_ref[...], preferred_element_type=jnp.float32)
    h1 = jnp.tanh(h1 + b1_ref[...])                      # f32 bias + tanh
    # Layer 2: block-diagonal Linear(fc1, fc2) + Tanh
    h2 = jnp.dot(h1.astype(w2_ref.dtype), w2_ref[...],
                 preferred_element_type=jnp.float32)
    h2 = jnp.tanh(h2 + b2_ref[...])
    # Layer 3 fused with the output relayout: contract both operands on their
    # last dim (attention-style A @ B^T) so the result comes out transposed,
    # (P, tm_p), i.e. lane-dense for the store.
    vT = lax.dot_general(
        w3t_ref[...], h2.astype(w3t_ref.dtype),
        dimension_numbers=(((1,), (1,)), ((), ())),
        preferred_element_type=jnp.float32)
    out_ref[...] = (vT + b3_ref[...]).astype(out_ref.dtype)


def critic_forward(state, params, *, tile_rows=8192, compute_dtype=jnp.bfloat16):
    """value = critic(state) -> (B, 1) float32.

    Intended for batched value evaluation during PPO updates; for tiny
    per-env-step batches plain XLA is cheaper than the pallas_call launch
    overhead.
    """
    w1, b1, w2, b2, w3, b3 = params
    B, D = state.shape
    P = _PACK
    fc1 = w1.shape[1]
    fc2 = w2.shape[1]

    # ---- pack P logical rows per lane-row (contiguous reshape) ----
    B_pad = _round_up(B, P)
    x = state.astype(compute_dtype)
    if B_pad != B:
        x = jnp.pad(x, ((0, B_pad - B), (0, 0)))
    Bp = B_pad // P
    xp = x.reshape(Bp, P * D)

    # ---- block-diagonal weights: one MXU pass handles P rows ----
    eye = jnp.eye(P, dtype=jnp.float32)
    w1_bd = jnp.kron(eye, w1.astype(jnp.float32)).astype(compute_dtype)      # (P*D,   P*fc1)
    w2_bd = jnp.kron(eye, w2.astype(jnp.float32)).astype(compute_dtype)      # (P*fc1, P*fc2)
    w3t_bd = jnp.kron(eye, w3.astype(jnp.float32).T).astype(compute_dtype)   # (P,     P*fc2)
    b1_bd = jnp.tile(b1.astype(jnp.float32).reshape(1, fc1), (1, P))         # (1, P*fc1)
    b2_bd = jnp.tile(b2.astype(jnp.float32).reshape(1, fc2), (1, P))         # (1, P*fc2)
    b3_bd = jnp.tile(b3.astype(jnp.float32).reshape(1, 1), (P, 1))           # (P, 1)

    # ---- packed batch tile ----
    # Default ~8192 logical rows (1024 packed) per step: ~256 KiB bf16 per
    # input buffer + ~32 KiB f32 output buffer -> trivially under VMEM on all
    # generations even double-buffered, while amortizing per-step overhead.
    tmp_cap = max(128, tile_rows // P)
    if Bp <= tmp_cap:
        tm_p = Bp                       # single full block (block == array)
    else:
        # aim for >= 4 grid steps (2-TC sharding on v7x + pipeline overlap),
        # keep the tile a multiple of 128 so output blocks are lane-dense.
        tm_p = min(tmp_cap, _round_up(pl.cdiv(Bp, 4), 128))
    grid = (pl.cdiv(Bp, tm_p),)

    def resident(arr):
        # Full-array block + constant index map: fetched into VMEM once and
        # kept resident across all grid steps.
        return pl.BlockSpec(arr.shape, lambda i: (0,) * arr.ndim)

    out = pl.pallas_call(
        _critic_kernel,
        out_shape=jax.ShapeDtypeStruct((P, Bp), jnp.float32),
        grid=grid,
        in_specs=[
            pl.BlockSpec((tm_p, P * D), lambda i: (i, 0)),   # streamed packed state
            resident(w1_bd), resident(b1_bd),
            resident(w2_bd), resident(b2_bd),
            resident(w3t_bd), resident(b3_bd),
        ],
        out_specs=pl.BlockSpec((P, tm_p), lambda i: (0, i)),  # lane-dense output
        compiler_params=pltpu.CompilerParams(
            # Batch tiles are independent -> shard across both TensorCores on
            # v7x; harmless on single-TC v5e/v6e.
            dimension_semantics=("parallel",),
        ),
    )(xp, w1_bd, b1_bd, w2_bd, b2_bd, w3t_bd, b3_bd)

    # (P, Bp) -> (B, 1): out[j, r] is logical row r*P + j.
    return out.T.reshape(B_pad, 1)[:B]


def init_critic_params(key, input_dims, fc1_dims=32, fc2_dims=32):
    """Deterministic init matching torch.nn.Linear default (uniform +/- 1/sqrt(fan_in)).
    Weights are stored transposed: shape (in, out)."""
    def linear(k, fan_in, fan_out):
        kw, kb = jax.random.split(k)
        bound = 1.0 / jnp.sqrt(float(fan_in))
        w = jax.random.uniform(kw, (fan_in, fan_out), jnp.float32, -bound, bound)
        b = jax.random.uniform(kb, (1, fan_out), jnp.float32, -bound, bound)
        return w, b

    k1, k2, k3 = jax.random.split(key, 3)
    w1, b1 = linear(k1, input_dims, fc1_dims)
    w2, b2 = linear(k2, fc1_dims, fc2_dims)
    w3, b3 = linear(k3, fc2_dims, 1)
    return (w1, b1, w2, b2, w3, b3)


def critic_reference(state, params):
    """Pure-JAX f32 reference for correctness check."""
    w1, b1, w2, b2, w3, b3 = params
    h1 = jnp.tanh(state @ w1 + b1)
    h2 = jnp.tanh(h1 @ w2 + b2)
    return h2 @ w3 + b3


if __name__ == "__main__":
    key = jax.random.PRNGKey(0)
    k_params, k_state = jax.random.split(key)

    input_dims = 16      # observation size (input_dims of the module)
    fc1_dims = fc2_dims = 32
    params = init_critic_params(k_params, input_dims, fc1_dims, fc2_dims)

    batch = 2048
    state = jax.random.normal(k_state, (batch, input_dims), jnp.float32)
    ref = critic_reference(state, params)

    # Default config: single large packed tile.
    value = jax.block_until_ready(critic_forward(state, params))
    assert value.shape == (batch, 1)
    # bf16 input/weight traffic -> loosened tolerance vs the f32 reference.
    assert jnp.allclose(value, ref, atol=2e-2, rtol=2e-2), "mismatch vs reference (default)"

    # Multi-tile pipelined path: grid >= 2, 128-lane output blocks.
    value_mt = jax.block_until_ready(critic_forward(state, params, tile_rows=1024))
    assert value_mt.shape == (batch, 1)
    assert jnp.allclose(value_mt, ref, atol=2e-2, rtol=2e-2), "mismatch vs reference (multi-tile)"

    # Batch not a multiple of the packing factor (exercise pad + slice path).
    small_state = state[:37]
    small_value = jax.block_until_ready(critic_forward(small_state, params))
    assert small_value.shape == (37, 1)
    assert jnp.allclose(small_value, ref[:37], atol=2e-2, rtol=2e-2), "mismatch vs reference (small)"

    print("KERNEL_OK")
</pallas_src>

<mosaic_0001>
module attributes {stable_mosaic.version = 11 : i64} {
  func.func @_critic_kernel(%arg0: i32, %arg1: memref<256x128xbf16, #tpu.memory_space<vmem>>, %arg2: memref<128x256xbf16, #tpu.memory_space<vmem>>, %arg3: memref<1x256xf32, #tpu.memory_space<vmem>>, %arg4: memref<256x256xbf16, #tpu.memory_space<vmem>>, %arg5: memref<1x256xf32, #tpu.memory_space<vmem>>, %arg6: memref<8x256xbf16, #tpu.memory_space<vmem>>, %arg7: memref<8x1xf32, #tpu.memory_space<vmem>>, %arg8: memref<8x256xf32, #tpu.memory_space<vmem>>) attributes {dimension_semantics = [#tpu.dimension_semantics<parallel>], iteration_bounds = array<i64: 1>, scalar_prefetch = 0 : i64, scratch_operands = 0 : i64, tpu.core_type = #tpu.core_type<tc>, window_params = [{transform_indices = @transform_0, window_bounds = array<i64: 256, 128>}, {pipeline_mode = #tpu.pipeline_mode<synchronous>, transform_indices = @transform_1, window_bounds = array<i64: 128, 256>}, {pipeline_mode = #tpu.pipeline_mode<synchronous>, transform_indices = @transform_2, window_bounds = array<i64: 1, 256>}, {pipeline_mode = #tpu.pipeline_mode<synchronous>, transform_indices = @transform_3, window_bounds = array<i64: 256, 256>}, {pipeline_mode = #tpu.pipeline_mode<synchronous>, transform_indices = @transform_4, window_bounds = array<i64: 1, 256>}, {pipeline_mode = #tpu.pipeline_mode<synchronous>, transform_indices = @transform_5, window_bounds = array<i64: 8, 256>}, {pipeline_mode = #tpu.pipeline_mode<synchronous>, transform_indices = @transform_6, window_bounds = array<i64: 8, 1>}, {transform_indices = @transform_7, window_bounds = array<i64: 8, 256>}]} {
    %c0 = arith.constant 0 : index
    %c0_0 = arith.constant 0 : index
    %0 = vector.load %arg1[%c0, %c0_0] : memref<256x128xbf16, #tpu.memory_space<vmem>>, vector<256x128xbf16>
    %c0_1 = arith.constant 0 : index
    %c0_2 = arith.constant 0 : index
    %1 = vector.load %arg2[%c0_1, %c0_2] : memref<128x256xbf16, #tpu.memory_space<vmem>>, vector<128x256xbf16>
    %cst = arith.constant dense<0.000000e+00> : vector<256x256xf32>
    %2 = tpu.matmul %0, %1, %cst {dimension_numbers = #tpu.dot_dimension_numbers<[1], [0], [0], [1], [0, 0, 1, 1], [], []>} : vector<256x128xbf16>, vector<128x256xbf16>, vector<256x256xf32> -> vector<256x256xf32>
    %c0_3 = arith.constant 0 : index
    %c0_4 = arith.constant 0 : index
    %3 = vector.load %arg3[%c0_3, %c0_4] : memref<1x256xf32, #tpu.memory_space<vmem>>, vector<1x256xf32>
    %4 = vector.broadcast %3 : vector<1x256xf32> to vector<256x256xf32>
    %5 = arith.addf %2, %4 : vector<256x256xf32>
    %6 = math.tanh %5 : vector<256x256xf32>
    %7 = arith.truncf %6 : vector<256x256xf32> to vector<256x256xbf16>
    %c0_5 = arith.constant 0 : index
    %c0_6 = arith.constant 0 : index
    %8 = vector.load %arg4[%c0_5, %c0_6] : memref<256x256xbf16, #tpu.memory_space<vmem>>, vector<256x256xbf16>
    %cst_7 = arith.constant dense<0.000000e+00> : vector<256x256xf32>
    %9 = tpu.matmul %7, %8, %cst_7 {dimension_numbers = #tpu.dot_dimension_numbers<[1], [0], [0], [1], [0, 0, 1, 1], [], []>} : vector<256x256xbf16>, vector<256x256xbf16>, vector<256x256xf32> -> vector<256x256xf32>
    %c0_8 = arith.constant 0 : index
    %c0_9 = arith.constant 0 : index
    %10 = vector.load %arg5[%c0_8, %c0_9] : memref<1x256xf32, #tpu.memory_space<vmem>>, vector<1x256xf32>
    %11 = vector.broadcast %10 : vector<1x256xf32> to vector<256x256xf32>
    %12 = arith.addf %9, %11 : vector<256x256xf32>
    %13 = math.tanh %12 : vector<256x256xf32>
    %c0_10 = arith.constant 0 : index
    %c0_11 = arith.constant 0 : index
    %14 = vector.load %arg6[%c0_10, %c0_11] : memref<8x256xbf16, #tpu.memory_space<vmem>>, vector<8x256xbf16>
    %15 = arith.truncf %13 : vector<256x256xf32> to vector<256x256xbf16>
    %cst_12 = arith.constant dense<0.000000e+00> : vector<8x256xf32>
    %16 = tpu.matmul %14, %15, %cst_12 {dimension_numbers = #tpu.dot_dimension_numbers<[1], [1], [0], [0], [0, 0, 1, 0], [], []>} : vector<8x256xbf16>, vector<256x256xbf16>, vector<8x256xf32> -> vector<8x256xf32>
    %c0_13 = arith.constant 0 : index
    %c0_14 = arith.constant 0 : index
    %17 = vector.load %arg7[%c0_13, %c0_14] : memref<8x1xf32, #tpu.memory_space<vmem>>, vector<8x1xf32>
    %18 = vector.broadcast %17 : vector<8x1xf32> to vector<8x256xf32>
    %19 = arith.addf %16, %18 : vector<8x256xf32>
    %c0_15 = arith.constant 0 : index
    %c0_16 = arith.constant 0 : index
    %20 = vector.load %arg8[%c0_15, %c0_16] : memref<8x256xf32, #tpu.memory_space<vmem>>, vector<8x256xf32>
    tpu.vector_store %arg8[%c0_15, %c0_16], %19 {strides = array<i32>} : memref<8x256xf32, #tpu.memory_space<vmem>>, vector<8x256xf32>,
    return
  }
  func.func @transform_0(%arg0: i32) -> (i32, i32) {
    %c0_i32 = arith.constant 0 : i32
    %c0_i32_0 = arith.constant 0 : i32
    return %arg0, %c0_i32 : i32, i32
  }
  func.func @transform_1(%arg0: i32) -> (i32, i32) {
    %c0_i32 = arith.constant 0 : i32
    %c0_i32_0 = arith.constant 0 : i32
    %c0_i32_1 = arith.constant 0 : i32
    return %c0_i32, %c0_i32_0 : i32, i32
  }
  func.func @transform_2(%arg0: i32) -> (i32, i32) {
    %c0_i32 = arith.constant 0 : i32
    %c0_i32_0 = arith.constant 0 : i32
    %c0_i32_1 = arith.constant 0 : i32
    return %c0_i32, %c0_i32_0 : i32, i32
  }
  func.func @transform_3(%arg0: i32) -> (i32, i32) {
    %c0_i32 = arith.constant 0 : i32
    %c0_i32_0 = arith.constant 0 : i32
    %c0_i32_1 = arith.constant 0 : i32
    return %c0_i32, %c0_i32_0 : i32, i32
  }
  func.func @transform_4(%arg0: i32) -> (i32, i32) {
    %c0_i32 = arith.constant 0 : i32
    %c0_i32_0 = arith.constant 0 : i32
    %c0_i32_1 = arith.constant 0 : i32
    return %c0_i32, %c0_i32_0 : i32, i32
  }
  func.func @transform_5(%arg0: i32) -> (i32, i32) {
    %c0_i32 = arith.constant 0 : i32
    %c0_i32_0 = arith.constant 0 : i32
    %c0_i32_1 = arith.constant 0 : i32
    return %c0_i32, %c0_i32_0 : i32, i32
  }
  func.func @transform_6(%arg0: i32) -> (i32, i32) {
    %c0_i32 = arith.constant 0 : i32
    %c0_i32_0 = arith.constant 0 : i32
    %c0_i32_1 = arith.constant 0 : i32
    return %c0_i32, %c0_i32_0 : i32, i32
  }
  func.func @transform_7(%arg0: i32) -> (i32, i32) {
    %c0_i32 = arith.constant 0 : i32
    %c0_i32_0 = arith.constant 0 : i32
    return %c0_i32, %arg0 : i32, i32
  }
}

</mosaic_0001>

<bundles_post_ra>
// kernel: tpu_custom_call.1
= control target key start
LH: loop header
LB: loop body
LE: loop exit
PB: predicated region body
PF: predicated region fallthrough
CT: control target
= control target key end

     0   :  { %12 = vsyncpa [#allocation3], 0  ;;  %s2071_s0 = inlined_call_operand.hbm [shape: bf16[256,128], index: 0, kind: input, shape index: {}]   ;;  %s2072_s1 = inlined_call_operand.hbm [shape: bf16[128,256], index: 1, kind: input, shape index: {}]   ;;  %s2073_s2 = inlined_call_operand.vmem [shape: f32[1,256], index: 2, kind: input, shape index: {}]   ;;  %s2074_s3 = inlined_call_operand.hbm [shape: bf16[256,256], index: 3, kind: input, shape index: {}]   ;;  %s2075_s4 = inlined_call_operand.vmem [shape: f32[1,256], index: 4, kind: input, shape index: {}]   ;;  %s2076_s5 = inlined_call_operand.vmem [shape: bf16[8,256], index: 5, kind: input, shape index: {}]   ;;  %s2077_s6 = inlined_call_operand.vmem [shape: f32[8,1], index: 6, kind: input, shape index: {}]   ;;  %s2078_s7 = inlined_call_operand.hbm [shape: f32[8,256], index: 7, kind: output, shape index: {}]  }
   0x1   :  { %13 = vsyncpa [#allocation6], 0 }
   0x2   :  { %14 = vsyncpa [#allocation4], 0  ;;  %s1668_s24 = smov [#allocation5]  }
   0x3   :  { %s32_s25 = sshll.u32 %s1668_s24, 4  ;;  %s33_s25 = int_to_ptr.vmem [resolvable:$true] %s32_s25 }
   0x4   :  { %s1590_s26 = scalar_lea.vmem %s33_s25, 2048  ;;  %p1595_p1 = scmp.lt.s32.totalorder %s33_s25, %s33_s25 }
   0x5   :  { %p1591_p0 = scmp.ne.s32.totalorder %s33_s25, %s1590_s26  ;;  %p1596_p2 = scmp.lt.s32.totalorder %s1590_s26, %s1590_s26 }
   0x7   :  { %p1597_p3 = por %p1596_p2, %p1595_p1 }
   0x9   :  { %p1598_p4 = pnand %p1597_p3, %p1591_p0 }
   0xb   :  { %1601 = shalt.err (!%p1598_p4)
}
   0xc   :  { %s1669_s27 = smov 128   ;;  %s1670_s28 = smov 8  }
   0xd   :  { %38 = dma.hbm_to_vmem [thread:$0]  %s2072_s1, 2048, %s33_s25, [#allocation6], %s1669_s27, %s1669_s27, %s1670_s28  }
   0xe   :  { %s1671_s8 = smov [#allocation2]  }
   0xf   :  { %s20_s9 = sshll.u32 %s1671_s8, 4  ;;  %s21_s9 = int_to_ptr.vmem [resolvable:$true] %s20_s9 }
  0x10   :  { %s1610_s10 = scalar_lea.vmem %s21_s9, 2048  ;;  %p1615_p6 = scmp.lt.s32.totalorder %s21_s9, %s21_s9 }
  0x11   :  { %p1611_p5 = scmp.ne.s32.totalorder %s21_s9, %s1610_s10  ;;  %p1616_p7 = scmp.lt.s32.totalorder %s1610_s10, %s1610_s10 }
  0x13   :  { %p1617_p8 = por %p1616_p7, %p1615_p6 }
  0x15   :  { %p1618_p9 = pnand %p1617_p8, %p1611_p5 }
  0x17   :  { %1621 = shalt.err (!%p1618_p9)
}
  0x18   :  { %s1672_s11 = smov 64   ;;  %s1673_s12 = smov 4  }
  0x19   :  { %26 = dma.hbm_to_vmem [thread:$0]  %s2071_s0, 2048, %s21_s9, [#allocation3], %s1672_s11, %s1672_s11, %s1673_s12  }
  0x1a   :  { %s1674_s15 = smov [#allocation7]  }
  0x1b   :  { %s46_s16 = sshll.u32 %s1674_s15, 4  ;;  %s47_s16 = int_to_ptr.vmem [resolvable:$true] %s46_s16 }
  0x1c   :  { %s1630_s1 = scalar_lea.vmem %s47_s16, 4096  ;;  %p1635_p11 = scmp.lt.s32.totalorder %s47_s16, %s47_s16 }
  0x1d   :  { %p1631_p10 = scmp.ne.s32.totalorder %s47_s16, %s1630_s1  ;;  %p1636_p12 = scmp.lt.s32.totalorder %s1630_s1, %s1630_s1 }
  0x1f   :  { %p1637_p13 = por %p1636_p12, %p1635_p11 }
  0x21   :  { %p1638_p0 = pnand %p1637_p13, %p1631_p10 }
  0x23   :  { %1641 = shalt.err (!%p1638_p0)
}
  0x24   :  { %52 = dma.hbm_to_vmem [thread:$0]  %s2074_s3, 4096, %s47_s16, [#allocation6], %s1669_s27, %s1669_s27, %s1670_s28  }
  0x25   :  { %1662 = dma.done.wait [#allocation3], 2048  }
  0x26   :  { %1663 = vsyncadd [#allocation3], 4294965248 }
  0x27   :  { %1664 = dma.done.wait [#allocation6], 6144  }
  0x28   :  { %1665 = vsyncadd [#allocation6], 4294961152  ;;  %v1675_v0 = vmov 0   ;;  %v1236_v1 = vld [vmem:[#allocation5 + $0x74] ss:$8 sps:$4 sm:$0xff]   ;;  %v1260_v20 = vld [vmem:[#allocation2] sm:$0xff]  }
  0x29   :  { %337 = vmatprep.mubr.bf16.mxu0 %v1675_v0  ;;  %1235 = vset.pattern.permute.xlu0 %v1675_v0  ;;  %v1238_v2 = vld [vmem:[#allocation5 + $0x70] ss:$8 sps:$4 sm:$0xff]   ;;  %v1239_v3 = vld [vmem:[#allocation5 + $0x64] ss:$8 sps:$4 sm:$0xff]   ;;  %v1241_v4 = vld [vmem:[#allocation5 + $0x60] ss:$8 sps:$4 sm:$0xff]  }
  0x2a   :  { %305 = vmatprep.subr.bf16.mxu0 %v1236_v1  ;;  %v1242_v5 = vld [vmem:[#allocation5 + $0x54] ss:$8 sps:$4 sm:$0xff]   ;;  %v1244_v6 = vld [vmem:[#allocation5 + $0x50] ss:$8 sps:$4 sm:$0xff]   ;;  %v1245_v7 = vld [vmem:[#allocation5 + $0x44] ss:$8 sps:$4 sm:$0xff]  }
  0x2b   :  { %306 = vmatpush1.bf16.msra.mxu0 %v1238_v2  ;;  %v1247_v8 = vld [vmem:[#allocation5 + $0x40] ss:$8 sps:$4 sm:$0xff]   ;;  %v1248_v9 = vld [vmem:[#allocation5 + $0x34] ss:$8 sps:$4 sm:$0xff]   ;;  %v1250_v10 = vld [vmem:[#allocation5 + $0x30] ss:$8 sps:$4 sm:$0xff]   ;;  %v119_v2 = vlaneseq }
  0x2c   :  { %307 = vmatprep.subr.bf16.mxu0 %v1239_v3  ;;  %v1251_v11 = vld [vmem:[#allocation5 + $0x24] ss:$8 sps:$4 sm:$0xff]   ;;  %v1253_v12 = vld [vmem:[#allocation5 + $0x20] ss:$8 sps:$4 sm:$0xff]   ;;  %v1254_v13 = vld [vmem:[#allocation5 + $0x14] ss:$8 sps:$4 sm:$0xff]  }
  0x2d   :  { %v1256_v14 = vld [vmem:[#allocation5 + $0x10] ss:$8 sps:$4 sm:$0xff]   ;;  %v1257_v15 = vld [vmem:[#allocation5 + $0x4] ss:$8 sps:$4 sm:$0xff]   ;;  %v1259_v16 = vld [vmem:[#allocation5] ss:$8 sps:$4 sm:$0xff]  }
  0x2e   :  { %v1276_v17 = vld [vmem:[#allocation7 + $0x74] ss:$8 sps:$4 sm:$0xff]   ;;  %v1278_v18 = vld [vmem:[#allocation7 + $0x70] ss:$8 sps:$4 sm:$0xff]   ;;  %v1279_v19 = vld [vmem:[#allocation7 + $0x64] ss:$8 sps:$4 sm:$0xff]  }
  0x2f   :  { %308 = vmatpush1.bf16.msra.mxu0 %v1241_v4  ;;  %798 = vmatprep.subr.bf16.mxu1 %v1276_v17  ;;  %v1281_v21 = vld [vmem:[#allocation7 + $0x60] ss:$8 sps:$4 sm:$0xff]   ;;  %v1282_v22 = vld [vmem:[#allocation7 + $0x54] ss:$8 sps:$4 sm:$0xff]   ;;  %v1284_v23 = vld [vmem:[#allocation7 + $0x50] ss:$8 sps:$4 sm:$0xff]  }
  0x30   :  { %309 = vmatprep.subr.bf16.mxu0 %v1242_v5  ;;  %799 = vmatpush1.bf16.msra.mxu1 %v1278_v18  ;;  %v1285_v24 = vld [vmem:[#allocation7 + $0x44] ss:$8 sps:$4 sm:$0xff]   ;;  %v1287_v26 = vld [vmem:[#allocation7 + $0x40] ss:$8 sps:$4 sm:$0xff]   ;;  %v1288_v27 = vld [vmem:[#allocation7 + $0x34] ss:$8 sps:$4 sm:$0xff]  }
  0x31   :  { %800 = vmatprep.subr.bf16.mxu1 %v1279_v19  ;;  %v1261_v25 = vld [vmem:[#allocation2 + $0x8] sm:$0xff]   ;;  %v1290_v28 = vld [vmem:[#allocation7 + $0x30] ss:$8 sps:$4 sm:$0xff]   ;;  %v1294_v32 = vld [vmem:[#allocation7 + $0x14] ss:$8 sps:$4 sm:$0xff]   ;;  %v1743_v3 = vshrl.u32 %v119_v2, 7 }
  0x32   :  { %v1291_v29 = vld [vmem:[#allocation7 + $0x24] ss:$8 sps:$4 sm:$0xff]   ;;  %v1262_v30 = vld [vmem:[#allocation2 + $0x10] sm:$0xff]   ;;  %v1293_v31 = vld [vmem:[#allocation7 + $0x20] ss:$8 sps:$4 sm:$0xff]  }
  0x33   :  { %310 = vmatpush1.bf16.msra.mxu0 %v1244_v6  ;;  %v1296_v33 = vld [vmem:[#allocation7 + $0x10] ss:$8 sps:$4 sm:$0xff]   ;;  %v1297_v34 = vld [vmem:[#allocation7 + $0x4] ss:$8 sps:$4 sm:$0xff]   ;;  %v1299_v36 = vld [vmem:[#allocation7] ss:$8 sps:$4 sm:$0xff]  }
  0x34   :  { %311 = vmatprep.subr.bf16.mxu0 %v1245_v7  ;;  %801 = vmatpush1.bf16.msra.mxu1 %v1281_v21  ;;  %v1263_v35 = vld [vmem:[#allocation2 + $0x18] sm:$0xff]   ;;  %v1303_v39 = vld [vmem:[#allocation7 + $0xe4] ss:$8 sps:$4 sm:$0xff]   ;;  %v1305_v41 = vld [vmem:[#allocation7 + $0xe0] ss:$8 sps:$4 sm:$0xff]   ;;  %v125_v4 = vsub.s32 1, %v1743_v3 }
  0x35   :  { %802 = vmatprep.subr.bf16.mxu1 %v1282_v22  ;;  %v1300_v37 = vld [vmem:[#allocation7 + $0xf4] ss:$8 sps:$4 sm:$0xff]   ;;  %v1302_v38 = vld [vmem:[#allocation7 + $0xf0] ss:$8 sps:$4 sm:$0xff]   ;;  %v1264_v40 = vld [vmem:[#allocation2 + $0x20] sm:$0xff]   ;;  %v121_v6 = vsub.s32 0, %v1743_v3 }
  0x36   :  { %v1265_v42 = vld [vmem:[#allocation2 + $0x28] sm:$0xff]   ;;  %v1266_v43 = vld [vmem:[#allocation2 + $0x30] sm:$0xff]   ;;  %v1267_v44 = vld [vmem:[#allocation2 + $0x38] sm:$0xff]  }
  0x37   :  { %312 = vmatpush1.bf16.msra.mxu0 %v1247_v8  ;;  %v1268_v45 = vld [vmem:[#allocation2 + $0x40] sm:$0xff]   ;;  %v1306_v46 = vld [vmem:[#allocation7 + $0xd4] ss:$8 sps:$4 sm:$0xff]   ;;  %v1308_v47 = vld [vmem:[#allocation7 + $0xd0] ss:$8 sps:$4 sm:$0xff]  }
  0x38   :  { %313 = vmatprep.subr.bf16.mxu0 %v1248_v9  ;;  %803 = vmatpush1.bf16.msra.mxu1 %v1284_v23  ;;  %v1269_v48 = vld [vmem:[#allocation2 + $0x48] sm:$0xff]   ;;  %v1312_v51 = vld [vmem:[#allocation7 + $0xb4] ss:$8 sps:$4 sm:$0xff]   ;;  %v1314_v52 = vld [vmem:[#allocation7 + $0xb0] ss:$8 sps:$4 sm:$0xff]  }
  0x39   :  { %804 = vmatprep.subr.bf16.mxu1 %v1285_v24  ;;  %v1309_v49 = vld [vmem:[#allocation7 + $0xc4] ss:$8 sps:$4 sm:$0xff]   ;;  %v1311_v50 = vld [vmem:[#allocation7 + $0xc0] ss:$8 sps:$4 sm:$0xff]   ;;  %v1270_v53 = vld [vmem:[#allocation2 + $0x50] sm:$0xff]  }
  0x3a   :  { %v1315_v54 = vld [vmem:[#allocation7 + $0xa4] ss:$8 sps:$4 sm:$0xff]   ;;  %v1317_v55 = vld [vmem:[#allocation7 + $0xa0] ss:$8 sps:$4 sm:$0xff]   ;;  %v1318_v56 = vld [vmem:[#allocation7 + $0x94] ss:$8 sps:$4 sm:$0xff]  }
  0x3b   :  { %314 = vmatpush1.bf16.msra.mxu0 %v1250_v10  ;;  %v1320_v57 = vld [vmem:[#allocation7 + $0x90] ss:$8 sps:$4 sm:$0xff]   ;;  %v1321_v59 = vld [vmem:[#allocation7 + $0x84] ss:$8 sps:$4 sm:$0xff]   ;;  %v1323_v60 = vld [vmem:[#allocation7 + $0x80] ss:$8 sps:$4 sm:$0xff]  }
  0x3c   :  { %315 = vmatprep.subr.bf16.mxu0 %v1251_v11  ;;  %805 = vmatpush1.bf16.msra.mxu1 %v1287_v26  ;;  %v1271_v58 = vld [vmem:[#allocation2 + $0x58] sm:$0xff]   ;;  %v1272_v61 = vld [vmem:[#allocation2 + $0x60] sm:$0xff]   ;;  %v1273_v62 = vld [vmem:[#allocation2 + $0x68] sm:$0xff]  }
  0x3d   :  { %806 = vmatprep.subr.bf16.mxu1 %v1288_v27  ;;  %v1274_v63 = vld [vmem:[#allocation2 + $0x70] sm:$0xff]   ;;  %v1275_v1 = vld [vmem:[#allocation2 + $0x78] sm:$0xff]   ;;  %v117_v5 = vld [vmem:[%s2073_s2] sm:$0x3] }
  0x3e   :  { %v1752_v7 = vrot.slane %v117_v5, %v125_v4 }
  0x3f   :  { %316 = vmatpush1.bf16.msra.mxu0 %v1253_v12 }
  0x40   :  { %317 = vmatprep.subr.bf16.mxu0 %v1254_v13  ;;  %807 = vmatpush1.bf16.msra.mxu1 %v1290_v28 }
  0x41   :  { %808 = vmatprep.subr.bf16.mxu1 %v1291_v29 }
  0x43   :  { %318 = vmatpush1.bf16.msra.mxu0 %v1256_v14 }
  0x44   :  { %319 = vmatprep.subr.bf16.mxu0 %v1257_v15  ;;  %809 = vmatpush1.bf16.msra.mxu1 %v1293_v31 }
  0x45   :  { %810 = vmatprep.subr.bf16.mxu1 %v1294_v32 }
  0x47   :  { %320 = vmatpush1.bf16.msra.mxu0 %v1259_v16 }
  0x48   :  { %811 = vmatpush1.bf16.msra.mxu1 %v1296_v33 }
  0x49   :  { %812 = vmatprep.subr.bf16.mxu1 %v1297_v34 }
  0x4a   :  { %338 = vmatmul.mubr.bf16.vlgmr.msra.gmra.mxu0 %v1260_v20 }
  0x4b   :  { %347 = vmatprep.mubr.bf16.mxu0 %v1675_v0 }
  0x4c   :  { %813 = vmatpush1.bf16.msra.mxu1 %v1299_v36 }
  0x4d   :  { %814 = vmatprep.subr.bf16.mxu1 %v1300_v37 }
  0x50   :  { %815 = vmatpush2.bf16.msra.mxu1 %v1302_v38 }
  0x51   :  { %816 = vmatprep.subr.bf16.mxu1 %v1303_v39 }
  0x52   :  { %348 = vmatmul.mubr.bf16.gmra.mxu0 %v1261_v25 }
  0x53   :  { %357 = vmatprep.mubr.bf16.mxu0 %v1675_v0 }
  0x54   :  { %817 = vmatpush2.bf16.msra.mxu1 %v1305_v41 }
  0x55   :  { %818 = vmatprep.subr.bf16.mxu1 %v1306_v46 }
  0x58   :  { %819 = vmatpush2.bf16.msra.mxu1 %v1308_v47 }
  0x59   :  { %820 = vmatprep.subr.bf16.mxu1 %v1309_v49 }
  0x5a   :  { %358 = vmatmul.mubr.bf16.gmra.mxu0 %v1262_v30 }
  0x5b   :  { %367 = vmatprep.mubr.bf16.mxu0 %v1675_v0 }
  0x5c   :  { %821 = vmatpush2.bf16.msra.mxu1 %v1311_v50 }
  0x5d   :  { %822 = vmatprep.subr.bf16.mxu1 %v1312_v51 }
  0x60   :  { %823 = vmatpush2.bf16.msra.mxu1 %v1314_v52 }
  0x61   :  { %824 = vmatprep.subr.bf16.mxu1 %v1315_v54 }
  0x62   :  { %368 = vmatmul.mubr.bf16.gmra.mxu0 %v1263_v35 }
  0x63   :  { %377 = vmatprep.mubr.bf16.mxu0 %v1675_v0 }
  0x64   :  { %825 = vmatpush2.bf16.msra.mxu1 %v1317_v55 }
  0x65   :  { %826 = vmatprep.subr.bf16.mxu1 %v1318_v56 }
  0x68   :  { %827 = vmatpush2.bf16.msra.mxu1 %v1320_v57 }
  0x69   :  { %828 = vmatprep.subr.bf16.mxu1 %v1321_v59 }
  0x6a   :  { %378 = vmatmul.mubr.bf16.gmra.mxu0 %v1264_v40 }
  0x6b   :  { %387 = vmatprep.mubr.bf16.mxu0 %v1675_v0 }
  0x6c   :  { %829 = vmatpush2.bf16.msra.mxu1 %v1323_v60 }
  0x72   :  { %388 = vmatmul.mubr.bf16.gmra.mxu0 %v1265_v42 }
  0x73   :  { %397 = vmatprep.mubr.bf16.mxu0 %v1675_v0 }
  0x7a   :  { %398 = vmatmul.mubr.bf16.gmra.mxu0 %v1266_v43 }
  0x7b   :  { %407 = vmatprep.mubr.bf16.mxu0 %v1675_v0 }
  0x82   :  { %408 = vmatmul.mubr.bf16.gmra.mxu0 %v1267_v44 }
  0x83   :  { %417 = vmatprep.mubr.bf16.mxu0 %v1675_v0 }
  0x8a   :  { %418 = vmatmul.mubr.bf16.gmra.mxu0 %v1268_v45 }
  0x8b   :  { %427 = vmatprep.mubr.bf16.mxu0 %v1675_v0 }
  0x92   :  { %428 = vmatmul.mubr.bf16.gmra.mxu0 %v1269_v48 }
  0x93   :  { %437 = vmatprep.mubr.bf16.mxu0 %v1675_v0 }
  0x9a   :  { %438 = vmatmul.mubr.bf16.gmra.mxu0 %v1270_v53 }
  0x9b   :  { %447 = vmatprep.mubr.bf16.mxu0 %v1675_v0 }
  0xa2   :  { %448 = vmatmul.mubr.bf16.gmra.mxu0 %v1271_v58 }
  0xa3   :  { %457 = vmatprep.mubr.bf16.mxu0 %v1675_v0 }
  0xaa   :  { %458 = vmatmul.mubr.bf16.gmra.mxu0 %v1272_v61 }
  0xab   :  { %467 = vmatprep.mubr.bf16.mxu0 %v1675_v0 }
  0xb2   :  { %468 = vmatmul.mubr.bf16.gmra.mxu0 %v1273_v62 }
  0xb3   :  { %477 = vmatprep.mubr.bf16.mxu0 %v1675_v0 }
  0xba   :  { %478 = vmatmul.mubr.bf16.gmra.mxu0 %v1274_v63 }
  0xbb   :  { %487 = vmatprep.mubr.bf16.mxu0 %v1675_v0  ;;  %v1756_v0 = vrot.slane %v117_v5, %v121_v6 }
  0xc2   :  { %488 = vmatmul.mubr.bf16.gmra.mxu0 %v1275_v1 }
 0x10a   :  { %v339_v8 = vpop.f32.mrf.mxu0 }
 0x10b   :  { %v340_v13 = vadd.f32 %v339_v8, %v1756_v0 }
 0x10c   :  { %v341_v9 = vpop.f32.mrf.mxu0 }
 0x10d   :  { %v342_v10 = vadd.f32 %v341_v9, %v1752_v7 }
 0x10e   :  { %v343_v11 = vpop.f32.mrf.mxu0 }
 0x10f   :  { %v344_v12 = vadd.f32 %v343_v11, %v1756_v0  ;;  %1326 = vtanh.f32 %v342_v10 }
 0x110   :  { %v345_v14 = vpop.f32.mrf.mxu0 }
 0x111   :  { %v346_v15 = vadd.f32 %v345_v14, %v1752_v7  ;;  %1328 = vtanh.f32 %v344_v12 }
 0x112   :  { %v349_v16 = vpop.f32.mrf.mxu0 }
 0x113   :  { %1330 = vtanh.f32 %v346_v15  ;;  %v350_v21 = vadd.f32 %v349_v16, %v1756_v0 }
 0x114   :  { %1332 = vtanh.f32 %v340_v13  ;;  %v351_v17 = vpop.f32.mrf.mxu0 }
 0x115   :  { %v352_v18 = vadd.f32 %v351_v17, %v1752_v7 }
 0x116   :  { %v353_v19 = vpop.f32.mrf.mxu0 }
 0x117   :  { %v354_v20 = vadd.f32 %v353_v19, %v1756_v0  ;;  %1334 = vtanh.f32 %v352_v18 }
 0x118   :  { %v355_v22 = vpop.f32.mrf.mxu0 }
 0x119   :  { %v356_v23 = vadd.f32 %v355_v22, %v1752_v7  ;;  %1336 = vtanh.f32 %v354_v20 }
 0x11a   :  { %v359_v24 = vpop.f32.mrf.mxu0 }
 0x11b   :  { %1338 = vtanh.f32 %v356_v23  ;;  %v360_v32 = vadd.f32 %v359_v24, %v1756_v0 }
 0x11c   :  { %1340 = vtanh.f32 %v350_v21  ;;  %v361_v25 = vpop.f32.mrf.mxu0  ;;  %v1327_v27 = vpop.eup %1326 }
 0x11d   :  { %v362_v26 = vadd.f32 %v361_v25, %v1752_v7 }
 0x11e   :  { %v363_v28 = vpop.f32.mrf.mxu0  ;;  %v1329_v29 = vpop.eup %1328 }
 0x11f   :  { %v364_v30 = vadd.f32 %v363_v28, %v1756_v0  ;;  %1342 = vtanh.f32 %v362_v26 }
 0x120   :  { %v1331_v31 = vpop.eup %1330  ;;  %v365_v33 = vpop.f32.mrf.mxu0 }
 0x121   :  { %v1333_v34 = vpop.eup %1332  ;;  %v366_v35 = vadd.f32 %v365_v33, %v1752_v7  ;;  %v563_v36 = vpack.c.bf16 %v1331_v31, %v1327_v27  ;;  %1344 = vtanh.f32 %v364_v30 }
 0x122   :  { %v369_v37 = vpop.f32.mrf.mxu0  ;;  %v562_v38 = vpack.c.bf16 %v1329_v29, %v1333_v34 }
 0x123   :  { %1346 = vtanh.f32 %v366_v35  ;;  %830 = vmatprep.mubr.bf16.mxu1 %v563_v36  ;;  %v370_v46 = vadd.f32 %v369_v37, %v1756_v0 }
 0x124   :  { %1348 = vtanh.f32 %v360_v32  ;;  %v371_v39 = vpop.f32.mrf.mxu0  ;;  %831 = vmatmul.mubr.bf16.vlgmr.msra.gmra.mxu1 %v562_v38  ;;  %v1335_v41 = vpop.eup %1334 }
 0x125   :  { %v372_v40 = vadd.f32 %v371_v39, %v1752_v7 }
 0x126   :  { %v373_v42 = vpop.f32.mrf.mxu0  ;;  %v1337_v43 = vpop.eup %1336 }
 0x127   :  { %v374_v44 = vadd.f32 %v373_v42, %v1756_v0  ;;  %1350 = vtanh.f32 %v372_v40 }
 0x128   :  { %v1339_v45 = vpop.eup %1338  ;;  %v375_v47 = vpop.f32.mrf.mxu0 }
 0x129   :  { %v1341_v48 = vpop.eup %1340  ;;  %v376_v49 = vadd.f32 %v375_v47, %v1752_v7  ;;  %v565_v50 = vpack.c.bf16 %v1339_v45, %v1335_v41  ;;  %1352 = vtanh.f32 %v374_v44 }
 0x12a   :  { %v379_v51 = vpop.f32.mrf.mxu0  ;;  %v564_v52 = vpack.c.bf16 %v1337_v43, %v1341_v48 }
 0x12b   :  { %1354 = vtanh.f32 %v376_v49  ;;  %840 = vmatprep.mubr.bf16.mxu1 %v565_v50  ;;  %v380_v60 = vadd.f32 %v379_v51, %v1756_v0 }
 0x12c   :  { %1356 = vtanh.f32 %v370_v46  ;;  %v381_v53 = vpop.f32.mrf.mxu0  ;;  %841 = vmatmul.mubr.bf16.gmra.mxu1 %v564_v52  ;;  %v1343_v55 = vpop.eup %1342 }
 0x12d   :  { %v382_v54 = vadd.f32 %v381_v53, %v1752_v7 }
 0x12e   :  { %v383_v56 = vpop.f32.mrf.mxu0  ;;  %v1345_v57 = vpop.eup %1344 }
 0x12f   :  { %v384_v58 = vadd.f32 %v383_v56, %v1756_v0  ;;  %1358 = vtanh.f32 %v382_v54 }
 0x130   :  { %v1347_v59 = vpop.eup %1346  ;;  %v385_v61 = vpop.f32.mrf.mxu0 }
 0x131   :  { %v1349_v62 = vpop.eup %1348  ;;  %v386_v63 = vadd.f32 %v385_v61, %v1752_v7  ;;  %v567_v1 = vpack.c.bf16 %v1347_v59, %v1343_v55  ;;  %1360 = vtanh.f32 %v384_v58 }
 0x132   :  { %v389_v2 = vpop.f32.mrf.mxu0  ;;  %v566_v5 = vpack.c.bf16 %v1345_v57, %v1349_v62 }
 0x133   :  { %1362 = vtanh.f32 %v386_v63  ;;  %850 = vmatprep.mubr.bf16.mxu1 %v567_v1  ;;  %v390_v15 = vadd.f32 %v389_v2, %v1756_v0 }
 0x134   :  { %1364 = vtanh.f32 %v380_v60  ;;  %v391_v8 = vpop.f32.mrf.mxu0  ;;  %851 = vmatmul.mubr.bf16.gmra.mxu1 %v566_v5  ;;  %v1351_v10 = vpop.eup %1350 }
 0x135   :  { %v392_v9 = vadd.f32 %v391_v8, %v1752_v7 }
 0x136   :  { %v393_v11 = vpop.f32.mrf.mxu0  ;;  %v1353_v12 = vpop.eup %1352 }
 0x137   :  { %v394_v13 = vadd.f32 %v393_v11, %v1756_v0  ;;  %1366 = vtanh.f32 %v392_v9 }
 0x138   :  { %v1355_v14 = vpop.eup %1354  ;;  %v395_v16 = vpop.f32.mrf.mxu0 }
 0x139   :  { %v1357_v17 = vpop.eup %1356  ;;  %v396_v18 = vadd.f32 %v395_v16, %v1752_v7  ;;  %v569_v19 = vpack.c.bf16 %v1355_v14, %v1351_v10  ;;  %1368 = vtanh.f32 %v394_v13 }
 0x13a   :  { %v399_v20 = vpop.f32.mrf.mxu0  ;;  %v568_v21 = vpack.c.bf16 %v1353_v12, %v1357_v17 }
 0x13b   :  { %1370 = vtanh.f32 %v396_v18  ;;  %860 = vmatprep.mubr.bf16.mxu1 %v569_v19  ;;  %v400_v29 = vadd.f32 %v399_v20, %v1756_v0 }
 0x13c   :  { %1372 = vtanh.f32 %v390_v15  ;;  %v401_v22 = vpop.f32.mrf.mxu0  ;;  %861 = vmatmul.mubr.bf16.gmra.mxu1 %v568_v21  ;;  %v1359_v24 = vpop.eup %1358 }
 0x13d   :  { %v402_v23 = vadd.f32 %v401_v22, %v1752_v7 }
 0x13e   :  { %v403_v25 = vpop.f32.mrf.mxu0  ;;  %v1361_v26 = vpop.eup %1360 }
 0x13f   :  { %v404_v27 = vadd.f32 %v403_v25, %v1756_v0  ;;  %1374 = vtanh.f32 %v402_v23 }
 0x140   :  { %v1363_v28 = vpop.eup %1362  ;;  %v405_v30 = vpop.f32.mrf.mxu0 }
 0x141   :  { %v1365_v31 = vpop.eup %1364  ;;  %v406_v32 = vadd.f32 %v405_v30, %v1752_v7  ;;  %v571_v33 = vpack.c.bf16 %v1363_v28, %v1359_v24  ;;  %1376 = vtanh.f32 %v404_v27 }
 0x142   :  { %v409_v34 = vpop.f32.mrf.mxu0  ;;  %v570_v35 = vpack.c.bf16 %v1361_v26, %v1365_v31 }
 0x143   :  { %1378 = vtanh.f32 %v406_v32  ;;  %870 = vmatprep.mubr.bf16.mxu1 %v571_v33  ;;  %v410_v43 = vadd.f32 %v409_v34, %v1756_v0 }
 0x144   :  { %1380 = vtanh.f32 %v400_v29  ;;  %v411_v36 = vpop.f32.mrf.mxu0  ;;  %871 = vmatmul.mubr.bf16.gmra.mxu1 %v570_v35  ;;  %v1367_v38 = vpop.eup %1366 }
 0x145   :  { %v412_v37 = vadd.f32 %v411_v36, %v1752_v7 }
 0x146   :  { %v413_v39 = vpop.f32.mrf.mxu0  ;;  %v1369_v40 = vpop.eup %1368 }
 0x147   :  { %v414_v41 = vadd.f32 %v413_v39, %v1756_v0  ;;  %1382 = vtanh.f32 %v412_v37 }
 0x148   :  { %v1371_v42 = vpop.eup %1370  ;;  %v415_v44 = vpop.f32.mrf.mxu0 }
 0x149   :  { %v1373_v45 = vpop.eup %1372  ;;  %v416_v46 = vadd.f32 %v415_v44, %v1752_v7  ;;  %v573_v47 = vpack.c.bf16 %v1371_v42, %v1367_v38  ;;  %1384 = vtanh.f32 %v414_v41 }
 0x14a   :  { %v419_v48 = vpop.f32.mrf.mxu0  ;;  %v572_v49 = vpack.c.bf16 %v1369_v40, %v1373_v45 }
 0x14b   :  { %1386 = vtanh.f32 %v416_v46  ;;  %880 = vmatprep.mubr.bf16.mxu1 %v573_v47  ;;  %v420_v57 = vadd.f32 %v419_v48, %v1756_v0 }
 0x14c   :  { %1388 = vtanh.f32 %v410_v43  ;;  %v421_v50 = vpop.f32.mrf.mxu0  ;;  %881 = vmatmul.mubr.bf16.gmra.mxu1 %v572_v49  ;;  %v1375_v52 = vpop.eup %1374 }
 0x14d   :  { %v422_v51 = vadd.f32 %v421_v50, %v1752_v7 }
 0x14e   :  { %v423_v53 = vpop.f32.mrf.mxu0  ;;  %v1377_v54 = vpop.eup %1376 }
 0x14f   :  { %v424_v55 = vadd.f32 %v423_v53, %v1756_v0  ;;  %1390 = vtanh.f32 %v422_v51 }
 0x150   :  { %v1379_v56 = vpop.eup %1378  ;;  %v425_v58 = vpop.f32.mrf.mxu0 }
 0x151   :  { %v1381_v59 = vpop.eup %1380  ;;  %v426_v60 = vadd.f32 %v425_v58, %v1752_v7  ;;  %v575_v61 = vpack.c.bf16 %v1379_v56, %v1375_v52  ;;  %1392 = vtanh.f32 %v424_v55 }
 0x152   :  { %v429_v62 = vpop.f32.mrf.mxu0  ;;  %v574_v63 = vpack.c.bf16 %v1377_v54, %v1381_v59 }
 0x153   :  { %1394 = vtanh.f32 %v426_v60  ;;  %890 = vmatprep.mubr.bf16.mxu1 %v575_v61  ;;  %v430_v12 = vadd.f32 %v429_v62, %v1756_v0 }
 0x154   :  { %1396 = vtanh.f32 %v420_v57  ;;  %v431_v1 = vpop.f32.mrf.mxu0  ;;  %891 = vmatmul.mubr.bf16.gmra.mxu1 %v574_v63  ;;  %v1383_v5 = vpop.eup %1382 }
 0x155   :  { %v432_v2 = vadd.f32 %v431_v1, %v1752_v7 }
 0x156   :  { %v433_v8 = vpop.f32.mrf.mxu0  ;;  %v1385_v9 = vpop.eup %1384 }
 0x157   :  { %v434_v10 = vadd.f32 %v433_v8, %v1756_v0  ;;  %1398 = vtanh.f32 %v432_v2 }
 0x158   :  { %v1387_v11 = vpop.eup %1386  ;;  %v435_v13 = vpop.f32.mrf.mxu0 }
 0x159   :  { %v1389_v14 = vpop.eup %1388  ;;  %v436_v15 = vadd.f32 %v435_v13, %v1752_v7  ;;  %v577_v16 = vpack.c.bf16 %v1387_v11, %v1383_v5  ;;  %1400 = vtanh.f32 %v434_v10 }
 0x15a   :  { %v439_v17 = vpop.f32.mrf.mxu0  ;;  %v576_v18 = vpack.c.bf16 %v1385_v9, %v1389_v14 }
 0x15b   :  { %1402 = vtanh.f32 %v436_v15  ;;  %900 = vmatprep.mubr.bf16.mxu1 %v577_v16  ;;  %v440_v26 = vadd.f32 %v439_v17, %v1756_v0 }
 0x15c   :  { %1404 = vtanh.f32 %v430_v12  ;;  %v441_v19 = vpop.f32.mrf.mxu0  ;;  %901 = vmatmul.mubr.bf16.gmra.mxu1 %v576_v18  ;;  %v1391_v21 = vpop.eup %1390 }
 0x15d   :  { %v442_v20 = vadd.f32 %v441_v19, %v1752_v7 }
 0x15e   :  { %v443_v22 = vpop.f32.mrf.mxu0  ;;  %v1393_v23 = vpop.eup %1392 }
 0x15f   :  { %v444_v24 = vadd.f32 %v443_v22, %v1756_v0  ;;  %1406 = vtanh.f32 %v442_v20 }
 0x160   :  { %v1395_v25 = vpop.eup %1394  ;;  %v445_v27 = vpop.f32.mrf.mxu0 }
 0x161   :  { %v1397_v28 = vpop.eup %1396  ;;  %v446_v29 = vadd.f32 %v445_v27, %v1752_v7  ;;  %v579_v30 = vpack.c.bf16 %v1395_v25, %v1391_v21  ;;  %1408 = vtanh.f32 %v444_v24 }
 0x162   :  { %v449_v31 = vpop.f32.mrf.mxu0  ;;  %v578_v32 = vpack.c.bf16 %v1393_v23, %v1397_v28 }
 0x163   :  { %1410 = vtanh.f32 %v446_v29  ;;  %910 = vmatprep.mubr.bf16.mxu1 %v579_v30  ;;  %v450_v40 = vadd.f32 %v449_v31, %v1756_v0 }
 0x164   :  { %1412 = vtanh.f32 %v440_v26  ;;  %v451_v33 = vpop.f32.mrf.mxu0  ;;  %911 = vmatmul.mubr.bf16.gmra.mxu1 %v578_v32  ;;  %v1399_v35 = vpop.eup %1398 }
 0x165   :  { %v452_v34 = vadd.f32 %v451_v33, %v1752_v7 }
 0x166   :  { %v453_v36 = vpop.f32.mrf.mxu0  ;;  %v1401_v37 = vpop.eup %1400 }
 0x167   :  { %v454_v38 = vadd.f32 %v453_v36, %v1756_v0  ;;  %1414 = vtanh.f32 %v452_v34 }
 0x168   :  { %v1403_v39 = vpop.eup %1402  ;;  %v455_v41 = vpop.f32.mrf.mxu0 }
 0x169   :  { %v1405_v42 = vpop.eup %1404  ;;  %v456_v43 = vadd.f32 %v455_v41, %v1752_v7  ;;  %v581_v44 = vpack.c.bf16 %v1403_v39, %v1399_v35  ;;  %1416 = vtanh.f32 %v454_v38 }
 0x16a   :  { %v459_v45 = vpop.f32.mrf.mxu0  ;;  %v580_v46 = vpack.c.bf16 %v1401_v37, %v1405_v42 }
 0x16b   :  { %1418 = vtanh.f32 %v456_v43  ;;  %920 = vmatprep.mubr.bf16.mxu1 %v581_v44  ;;  %v460_v54 = vadd.f32 %v459_v45, %v1756_v0 }
 0x16c   :  { %1420 = vtanh.f32 %v450_v40  ;;  %v461_v47 = vpop.f32.mrf.mxu0  ;;  %921 = vmatmul.mubr.bf16.gmra.mxu1 %v580_v46  ;;  %v1407_v49 = vpop.eup %1406 }
 0x16d   :  { %v462_v48 = vadd.f32 %v461_v47, %v1752_v7 }
 0x16e   :  { %v463_v50 = vpop.f32.mrf.mxu0  ;;  %v1409_v51 = vpop.eup %1408 }
 0x16f   :  { %v464_v52 = vadd.f32 %v463_v50, %v1756_v0  ;;  %1422 = vtanh.f32 %v462_v48 }
 0x170   :  { %v1411_v53 = vpop.eup %1410  ;;  %v465_v55 = vpop.f32.mrf.mxu0 }
 0x171   :  { %v1413_v56 = vpop.eup %1412  ;;  %v466_v57 = vadd.f32 %v465_v55, %v1752_v7  ;;  %v583_v58 = vpack.c.bf16 %v1411_v53, %v1407_v49  ;;  %1424 = vtanh.f32 %v464_v52  ;;  %v626_v53 = vld [vmem:[%s2075_s4] sm:$0x3] }
 0x172   :  { %v469_v59 = vpop.f32.mrf.mxu0  ;;  %v582_v60 = vpack.c.bf16 %v1409_v51, %v1413_v56  ;;  %v1831_v56 = vrot.slane %v626_v53, %v125_v4 }
 0x173   :  { %1426 = vtanh.f32 %v466_v57  ;;  %930 = vmatprep.mubr.bf16.mxu1 %v583_v58  ;;  %v470_v9 = vadd.f32 %v469_v59, %v1756_v0 }
 0x174   :  { %1428 = vtanh.f32 %v460_v54  ;;  %v471_v61 = vpop.f32.mrf.mxu0  ;;  %931 = vmatmul.mubr.bf16.gmra.mxu1 %v582_v60  ;;  %v1415_v63 = vpop.eup %1414  ;;  %v1827_v54 = vrot.slane %v626_v53, %v121_v6 }
 0x175   :  { %v472_v62 = vadd.f32 %v471_v61, %v1752_v7 }
 0x176   :  { %v473_v1 = vpop.f32.mrf.mxu0  ;;  %v1417_v2 = vpop.eup %1416 }
 0x177   :  { %v474_v5 = vadd.f32 %v473_v1, %v1756_v0  ;;  %1430 = vtanh.f32 %v472_v62 }
 0x178   :  { %v1419_v8 = vpop.eup %1418  ;;  %v475_v10 = vpop.f32.mrf.mxu0 }
 0x179   :  { %v1421_v11 = vpop.eup %1420  ;;  %v476_v12 = vadd.f32 %v475_v10, %v1752_v7  ;;  %v585_v13 = vpack.c.bf16 %v1419_v8, %v1415_v63  ;;  %1432 = vtanh.f32 %v474_v5 }
 0x17a   :  { %v479_v14 = vpop.f32.mrf.mxu0  ;;  %v584_v15 = vpack.c.bf16 %v1417_v2, %v1421_v11 }
 0x17b   :  { %1434 = vtanh.f32 %v476_v12  ;;  %940 = vmatprep.mubr.bf16.mxu1 %v585_v13  ;;  %v480_v23 = vadd.f32 %v479_v14, %v1756_v0 }
 0x17c   :  { %1436 = vtanh.f32 %v470_v9  ;;  %v481_v16 = vpop.f32.mrf.mxu0  ;;  %941 = vmatmul.mubr.bf16.gmra.mxu1 %v584_v15  ;;  %v1423_v18 = vpop.eup %1422 }
 0x17d   :  { %v482_v17 = vadd.f32 %v481_v16, %v1752_v7 }
 0x17e   :  { %v483_v19 = vpop.f32.mrf.mxu0  ;;  %v1425_v20 = vpop.eup %1424 }
 0x17f   :  { %v484_v21 = vadd.f32 %v483_v19, %v1756_v0  ;;  %1438 = vtanh.f32 %v482_v17 }
 0x180   :  { %v1427_v22 = vpop.eup %1426  ;;  %v485_v24 = vpop.f32.mrf.mxu0 }
 0x181   :  { %v1429_v25 = vpop.eup %1428  ;;  %v486_v26 = vadd.f32 %v485_v24, %v1752_v7  ;;  %v587_v27 = vpack.c.bf16 %v1427_v22, %v1423_v18  ;;  %1440 = vtanh.f32 %v484_v21 }
 0x182   :  { %v489_v28 = vpop.f32.mrf.mxu0  ;;  %v586_v29 = vpack.c.bf16 %v1425_v20, %v1429_v25 }
 0x183   :  { %1442 = vtanh.f32 %v486_v26  ;;  %950 = vmatprep.mubr.bf16.mxu1 %v587_v27  ;;  %v490_v37 = vadd.f32 %v489_v28, %v1756_v0 }
 0x184   :  { %1444 = vtanh.f32 %v480_v23  ;;  %v491_v30 = vpop.f32.mrf.mxu0  ;;  %951 = vmatmul.mubr.bf16.gmra.mxu1 %v586_v29  ;;  %v1431_v32 = vpop.eup %1430 }
 0x185   :  { %v492_v31 = vadd.f32 %v491_v30, %v1752_v7 }
 0x186   :  { %v493_v33 = vpop.f32.mrf.mxu0  ;;  %v1433_v34 = vpop.eup %1432 }
 0x187   :  { %v494_v35 = vadd.f32 %v493_v33, %v1756_v0  ;;  %1446 = vtanh.f32 %v492_v31 }
 0x188   :  { %v1435_v36 = vpop.eup %1434  ;;  %v495_v38 = vpop.f32.mrf.mxu0 }
 0x189   :  { %v1437_v39 = vpop.eup %1436  ;;  %v496_v40 = vadd.f32 %v495_v38, %v1752_v7  ;;  %v589_v41 = vpack.c.bf16 %v1435_v36, %v1431_v32  ;;  %1448 = vtanh.f32 %v494_v35 }
 0x18a   :  { %v588_v42 = vpack.c.bf16 %v1433_v34, %v1437_v39 }
 0x18b   :  { %1450 = vtanh.f32 %v496_v40  ;;  %960 = vmatprep.mubr.bf16.mxu1 %v589_v41 }
 0x18c   :  { %1452 = vtanh.f32 %v490_v37  ;;  %961 = vmatmul.mubr.bf16.gmra.mxu1 %v588_v42  ;;  %v1439_v43 = vpop.eup %1438 }
 0x18e   :  { %v1441_v44 = vpop.eup %1440 }
 0x190   :  { %v1443_v45 = vpop.eup %1442 }
 0x191   :  { %v1445_v46 = vpop.eup %1444  ;;  %v591_v47 = vpack.c.bf16 %v1443_v45, %v1439_v43 }
 0x192   :  { %v590_v48 = vpack.c.bf16 %v1441_v44, %v1445_v46 }
 0x193   :  { %970 = vmatprep.mubr.bf16.mxu1 %v591_v47 }
 0x194   :  { %971 = vmatmul.mubr.bf16.gmra.mxu1 %v590_v48  ;;  %v1447_v0 = vpop.eup %1446 }
 0x196   :  { %v1449_v49 = vpop.eup %1448 }
 0x198   :  { %v1451_v50 = vpop.eup %1450 }
 0x199   :  { %v1453_v51 = vpop.eup %1452  ;;  %v593_v7 = vpack.c.bf16 %v1451_v50, %v1447_v0 }
 0x19a   :  { %v592_v52 = vpack.c.bf16 %v1449_v49, %v1453_v51 }
 0x19b   :  { %980 = vmatprep.mubr.bf16.mxu1 %v593_v7 }
 0x19c   :  { %981 = vmatmul.mubr.bf16.gmra.mxu1 %v592_v52 }
 0x1e4   :  { %v832_v55 = vpop.f32.mrf.mxu1 }
 0x1e5   :  { %v833_v57 = vadd.f32 %v832_v55, %v1827_v54 }
 0x1e6   :  { %v834_v58 = vpop.f32.mrf.mxu1 }
 0x1e7   :  { %v835_v59 = vadd.f32 %v834_v58, %v1831_v56  ;;  %1454 = vtanh.f32 %v833_v57 }
 0x1e8   :  { %v836_v60 = vpop.f32.mrf.mxu1 }
 0x1e9   :  { %v837_v61 = vadd.f32 %v836_v60, %v1827_v54 }
 0x1ea   :  { %v838_v62 = vpop.f32.mrf.mxu1 }
 0x1eb   :  { %1456 = vtanh.f32 %v837_v61  ;;  %v839_v63 = vadd.f32 %v838_v62, %v1831_v56 }
 0x1ec   :  { %1458 = vtanh.f32 %v835_v59  ;;  %v842_v6 = vpop.f32.mrf.mxu1 }
 0x1ed   :  { %1460 = vtanh.f32 %v839_v63  ;;  %v843_v3 = vadd.f32 %v842_v6, %v1827_v54 }
 0x1ee   :  { %v844_v4 = vpop.f32.mrf.mxu1 }
 0x1ef   :  { %v845_v1 = vadd.f32 %v844_v4, %v1831_v56  ;;  %1462 = vtanh.f32 %v843_v3 }
 0x1f0   :  { %v846_v2 = vpop.f32.mrf.mxu1 }
 0x1f1   :  { %v847_v5 = vadd.f32 %v846_v2, %v1827_v54 }
 0x1f2   :  { %v848_v8 = vpop.f32.mrf.mxu1 }
 0x1f3   :  { %1464 = vtanh.f32 %v847_v5  ;;  %v849_v9 = vadd.f32 %v848_v8, %v1831_v56 }
 0x1f4   :  { %1466 = vtanh.f32 %v845_v1  ;;  %v852_v10 = vpop.f32.mrf.mxu1  ;;  %v1842_v13 = vpop.eup %1454 }
 0x1f5   :  { %1468 = vtanh.f32 %v849_v9  ;;  %v853_v11 = vadd.f32 %v852_v10, %v1827_v54 }
 0x1f6   :  { %v854_v12 = vpop.f32.mrf.mxu1 }
 0x1f7   :  { %v855_v15 = vadd.f32 %v854_v12, %v1831_v56  ;;  %1470 = vtanh.f32 %v853_v11 }
 0x1f8   :  { %v1844_v14 = vpop.eup %1456  ;;  %v856_v16 = vpop.f32.mrf.mxu1 }
 0x1f9   :  { %v1847_v17 = vpop.eup %1458  ;;  %v857_v18 = vadd.f32 %v856_v16, %v1827_v54  ;;  %v1056_v19 = vpack.c.bf16 %v1844_v14, %v1842_v13 }
 0x1fa   :  { %v1852_v20 = vpop.eup %1460  ;;  %v858_v21 = vpop.f32.mrf.mxu1 }
 0x1fb   :  { %1472 = vtanh.f32 %v857_v18  ;;  %v859_v22 = vadd.f32 %v858_v21, %v1831_v56  ;;  %v1057_v23 = vpack.c.bf16 %v1852_v20, %v1847_v17 }
 0x1fc   :  { %1474 = vtanh.f32 %v855_v15  ;;  %v862_v24 = vpop.f32.mrf.mxu1  ;;  %v1860_v27 = vpop.eup %1462 }
 0x1fd   :  { %1476 = vtanh.f32 %v859_v22  ;;  %v863_v25 = vadd.f32 %v862_v24, %v1827_v54 }
 0x1fe   :  { %v1858_v26 = vpop.f32.mrf.mxu1 }
 0x1ff   :  { %1478 = vtanh.f32 %v863_v25 }
 0x200   :  { %v1862_v28 = vpop.eup %1464  ;;  %v866_v29 = vpop.f32.mrf.mxu1 }
 0x201   :  { %v1864_v30 = vpop.eup %1466  ;;  %v867_v31 = vadd.f32 %v866_v29, %v1827_v54  ;;  %v1058_v32 = vpack.c.bf16 %v1862_v28, %v1860_v27 }
 0x202   :  { %v1869_v33 = vpop.eup %1468  ;;  %v1871_v34 = vpop.f32.mrf.mxu1 }
 0x203   :  { %1480 = vtanh.f32 %v867_v31  ;;  %v1059_v35 = vpack.c.bf16 %v1869_v33, %v1864_v30 }
 0x204   :  { %v1875_v36 = vpop.f32.mrf.mxu1  ;;  %v1879_v38 = vpop.eup %1470 }
 0x206   :  { %v1877_v37 = vpop.f32.mrf.mxu1 }
 0x208   :  { %v1881_v39 = vpop.eup %1472  ;;  %v1883_v40 = vpop.f32.mrf.mxu1 }
 0x209   :  { %v1885_v41 = vpop.eup %1474  ;;  %v1060_v42 = vpack.c.bf16 %v1881_v39, %v1879_v38 }
 0x20a   :  { %v1889_v43 = vpop.eup %1476  ;;  %v878_v44 = vpop.f32.mrf.mxu1 }
 0x20b   :  { %v1061_v45 = vpack.c.bf16 %v1889_v43, %v1885_v41  ;;  %v879_v22 = vadd.f32 %v878_v44, %v1831_v56 }
 0x20c   :  { %v1893_v46 = vpop.f32.mrf.mxu1  ;;  %v1895_v48 = vpop.eup %1478 }
 0x20e   :  { %v884_v47 = vpop.f32.mrf.mxu1 }
 0x20f   :  { %v885_v18 = vadd.f32 %v884_v47, %v1831_v56 }
 0x210   :  { %v1897_v0 = vpop.eup %1480  ;;  %v886_v49 = vpop.f32.mrf.mxu1 }
 0x211   :  { %v1062_v50 = vpack.c.bf16 %v1897_v0, %v1895_v48  ;;  %v887_v25 = vadd.f32 %v886_v49, %v1827_v54 }
 0x212   :  { %v888_v51 = vpop.f32.mrf.mxu1 }
 0x213   :  { %v889_v1 = vadd.f32 %v888_v51, %v1831_v56  ;;  %v1921_v51 = vld [vmem:[%s2076_s5] sm:$0xff] }
 0x214   :  { %v892_v7 = vpop.f32.mrf.mxu1 }
 0x215   :  { %v893_v15 = vadd.f32 %v892_v7, %v1827_v54  ;;  %v1225_v7 = vcombine.high %v1921_v51, %v1921_v51 }
 0x216   :  { %v894_v52 = vpop.f32.mrf.mxu1 }
 0x217   :  { %v895_v3 = vadd.f32 %v894_v52, %v1831_v56  ;;  %1133 = vmatprep.mubr.bf16.mxu0 %v1225_v7 }
 0x218   :  { %v896_v53 = vpop.f32.mrf.mxu1 }
 0x219   :  { %v897_v5 = vadd.f32 %v896_v53, %v1827_v54 }
 0x21a   :  { %v898_v55 = vpop.f32.mrf.mxu1 }
 0x21b   :  { %v899_v58 = vadd.f32 %v898_v55, %v1831_v56 }
 0x21c   :  { %v902_v57 = vpop.f32.mrf.mxu1 }
 0x21d   :  { %1482 = vtanh.f32 %v899_v58  ;;  %v903_v63 = vadd.f32 %v902_v57, %v1827_v54  ;;  %v883_v58 = vadd.f32 %v1893_v46, %v1827_v54  ;;  %v877_v46 = vadd.f32 %v1883_v40, %v1827_v54 }
 0x21e   :  { %v904_v59 = vpop.f32.mrf.mxu1 }
 0x21f   :  { %v905_v60 = vadd.f32 %v904_v59, %v1831_v56 }
 0x220   :  { %v906_v61 = vpop.f32.mrf.mxu1 }
 0x221   :  { %v907_v62 = vadd.f32 %v906_v61, %v1827_v54  ;;  %1484 = vtanh.f32 %v905_v60  ;;  %v875_v61 = vadd.f32 %v1877_v37, %v1831_v56  ;;  %v1088_v37 = vld [vmem:[%s2077_s6] sm:$0xff]  ;;  %s1676_s6 = smov [#allocation8]  }
 0x222   :  { %v908_v6 = vpop.f32.mrf.mxu1  ;;  %1091 = vperm.xlu0 %1235, %v1088_v37   ;;  %s1150_s22 = sshll.u32 %s1676_s6, 4  ;;  %s1151_s22 = int_to_ptr.vmem [resolvable:$true] %s1150_s22 }
 0x223   :  { %v909_v4 = vadd.f32 %v908_v6, %v1831_v56  ;;  %1486 = vtanh.f32 %v907_v62  ;;  %s1642_s23 = scalar_lea.vmem %s1151_s22, 256  ;;  %p1647_p2 = scmp.lt.s32.totalorder %s1151_s22, %s1151_s22 }
 0x224   :  { %v912_v2 = vpop.f32.mrf.mxu1  ;;  %p1643_p1 = scmp.ne.s32.totalorder %s1151_s22, %s1642_s23  ;;  %p1648_p3 = scmp.lt.s32.totalorder %s1642_s23, %s1642_s23 }
 0x225   :  { %1488 = vtanh.f32 %v909_v4  ;;  %v913_v8 = vadd.f32 %v912_v2, %v1827_v54 }
 0x226   :  { %1490 = vtanh.f32 %v903_v63  ;;  %v914_v9 = vpop.f32.mrf.mxu1  ;;  %p1649_p4 = por %p1648_p3, %p1647_p2 }
 0x227   :  { %1492 = vtanh.f32 %v895_v3  ;;  %v915_v10 = vadd.f32 %v914_v9, %v1831_v56  ;;  %v869_v3 = vadd.f32 %v1871_v34, %v1831_v56 }
 0x228   :  { %1494 = vtanh.f32 %v889_v1  ;;  %v916_v11 = vpop.f32.mrf.mxu1  ;;  %p1650_p5 = pnand %p1649_p4, %p1643_p1 }
 0x229   :  { %1496 = vtanh.f32 %v897_v5  ;;  %v917_v12 = vadd.f32 %v916_v11, %v1827_v54 }
 0x22a   :  { %1498 = vtanh.f32 %v913_v8  ;;  %v918_v16 = vpop.f32.mrf.mxu1  ;;  %v1483_v47 = vpop.eup %1482 }
 0x22b   :  { %1500 = vtanh.f32 %v917_v12  ;;  %v919_v21 = vadd.f32 %v918_v16, %v1831_v56 }
 0x22c   :  { %1502 = vtanh.f32 %v915_v10  ;;  %v922_v24 = vpop.f32.mrf.mxu1 }
 0x22d   :  { %1504 = vtanh.f32 %v919_v21  ;;  %v923_v29 = vadd.f32 %v922_v24, %v1827_v54 }
 0x22e   :  { %1506 = vtanh.f32 %v893_v15  ;;  %v924_v31 = vpop.f32.mrf.mxu1  ;;  %v1485_v44 = vpop.eup %1484 }
 0x22f   :  { %1508 = vtanh.f32 %v885_v18  ;;  %v925_v52 = vadd.f32 %v924_v31, %v1831_v56 }
 0x230   :  { %1510 = vtanh.f32 %v879_v22  ;;  %v926_v49 = vpop.f32.mrf.mxu1  ;;  %v1487_v53 = vpop.eup %1486  ;;  %v873_v22 = vadd.f32 %v1875_v36, %v1827_v54 }
 0x231   :  { %1512 = vtanh.f32 %v887_v25  ;;  %v927_v55 = vadd.f32 %v926_v49, %v1827_v54 }
 0x232   :  { %v1489_v57 = vpop.eup %1488  ;;  %1514 = vtanh.f32 %v923_v29  ;;  %v928_v59 = vpop.f32.mrf.mxu1  ;;  %v865_v29 = vadd.f32 %v1858_v26, %v1831_v56 }
 0x233   :  { %v1491_v60 = vpop.eup %1490  ;;  %1516 = vtanh.f32 %v927_v55  ;;  %v929_v62 = vadd.f32 %v928_v59, %v1831_v56  ;;  %v1071_v63 = vpack.c.bf16 %v1489_v57, %v1485_v44 }
 0x234   :  { %v1493_v6 = vpop.eup %1492  ;;  %1518 = vtanh.f32 %v925_v52  ;;  %v932_v4 = vpop.f32.mrf.mxu1  ;;  %v1070_v1 = vpack.c.bf16 %v1487_v53, %v1491_v60 }
 0x235   :  { %v1495_v2 = vpop.eup %1494  ;;  %1520 = vtanh.f32 %v929_v62  ;;  %1101 = vmatprep.subr.bf16.mxu0 %v1071_v63  ;;  %v1069_v5 = vpack.c.bf16 %v1483_v47, %v1493_v6  ;;  %v933_v9 = vadd.f32 %v932_v4, %v1827_v54 }
 0x236   :  { %v1497_v8 = vpop.eup %1496  ;;  %1522 = vtanh.f32 %v883_v58  ;;  %v934_v10 = vpop.f32.mrf.mxu1  ;;  %1102 = vmatpush1.bf16.xpose.msra.mxu0 %v1070_v1 }
 0x237   :  { %v1940_v34 = vpop.eup %1498  ;;  %1524 = vtanh.f32 %v875_v61  ;;  %1103 = vmatprep.subr.bf16.mxu0 %v1069_v5  ;;  %v935_v40 = vadd.f32 %v934_v10, %v1831_v56 }
 0x238   :  { %v1942_v11 = vpop.eup %1500  ;;  %1526 = vtanh.f32 %v869_v3  ;;  %v936_v12 = vpop.f32.mrf.mxu1 }
 0x239   :  { %v1945_v15 = vpop.eup %1502  ;;  %1528 = vtanh.f32 %v877_v46  ;;  %v937_v16 = vadd.f32 %v936_v12, %v1827_v54  ;;  %v1072_v18 = vpack.c.bf16 %v1942_v11, %v1940_v34 }
 0x23a   :  { %v1950_v21 = vpop.eup %1504  ;;  %1530 = vtanh.f32 %v933_v9  ;;  %v938_v24 = vpop.f32.mrf.mxu1 }
 0x23b   :  { %v1507_v25 = vpop.eup %1506  ;;  %1532 = vtanh.f32 %v937_v16  ;;  %v939_v31 = vadd.f32 %v938_v24, %v1831_v56  ;;  %v1073_v47 = vpack.c.bf16 %v1950_v21, %v1945_v15 }
 0x23c   :  { %v1509_v7 = vpop.eup %1508  ;;  %1534 = vtanh.f32 %v935_v40  ;;  %v942_v44 = vpop.f32.mrf.mxu1  ;;  %v1068_v52 = vpack.c.bf16 %v1497_v8, %v1507_v25 }
 0x23d   :  { %v1511_v49 = vpop.eup %1510  ;;  %1536 = vtanh.f32 %v939_v31  ;;  %v1067_v53 = vpack.c.bf16 %v1495_v2, %v1509_v7  ;;  %v943_v55 = vadd.f32 %v942_v44, %v1827_v54 }
 0x23e   :  { %v1513_v36 = vpop.eup %1512  ;;  %1538 = vtanh.f32 %v873_v22  ;;  %v1960_v57 = vpop.f32.mrf.mxu1  ;;  %1104 = vmatpush1.bf16.xpose.msra.mxu0 %v1068_v52 }
 0x23f   :  { %v1962_v26 = vpop.eup %1514  ;;  %1540 = vtanh.f32 %v865_v29  ;;  %1105 = vmatprep.subr.bf16.mxu0 %v1067_v53 }
 0x240   :  { %v1964_v58 = vpop.eup %1516  ;;  %v946_v59 = vpop.f32.mrf.mxu1  ;;  %1542 = vtanh.f32 %v943_v55 }
 0x241   :  { %v1966_v60 = vpop.eup %1518  ;;  %v947_v61 = vadd.f32 %v946_v59, %v1827_v54  ;;  %v1074_v62 = vpack.c.bf16 %v1964_v58, %v1962_v26 }
 0x242   :  { %v1971_v63 = vpop.eup %1520  ;;  %v1973_v6 = vpop.f32.mrf.mxu1 }
 0x243   :  { %v1523_v3 = vpop.eup %1522  ;;  %1544 = vtanh.f32 %v947_v61  ;;  %v1075_v4 = vpack.c.bf16 %v1971_v63, %v1966_v60 }
 0x244   :  { %v1525_v1 = vpop.eup %1524  ;;  %v1977_v2 = vpop.f32.mrf.mxu1  ;;  %v1066_v46 = vpack.c.bf16 %v1513_v36, %v1523_v3 }
 0x245   :  { %v1527_v5 = vpop.eup %1526  ;;  %v1065_v37 = vpack.c.bf16 %v1511_v49, %v1525_v1 }
 0x246   :  { %v1529_v8 = vpop.eup %1528  ;;  %v1979_v9 = vpop.f32.mrf.mxu1  ;;  %1106 = vmatpush1.bf16.xpose.msra.mxu0 %v1066_v46 }
 0x247   :  { %v1981_v10 = vpop.eup %1530  ;;  %1107 = vmatprep.subr.bf16.mxu0 %v1065_v37 }
 0x248   :  { %v1983_v40 = vpop.eup %1532  ;;  %v1985_v12 = vpop.f32.mrf.mxu1 }
 0x249   :  { %v1987_v16 = vpop.eup %1534  ;;  %v1076_v22 = vpack.c.bf16 %v1983_v40, %v1981_v10  ;;  %v1224_v10 = vcombine.low %v1921_v51, %v1921_v51 }
 0x24a   :  { %v1991_v24 = vpop.eup %1536  ;;  %v958_v25 = vpop.f32.mrf.mxu1 }
 0x24b   :  { %v1539_v29 = vpop.eup %1538  ;;  %v1077_v31 = vpack.c.bf16 %v1991_v24, %v1987_v16 }
 0x24c   :  { %v1541_v7 = vpop.eup %1540  ;;  %v962_v44 = vpop.f32.mrf.mxu1  ;;  %v1064_v52 = vpack.c.bf16 %v1529_v8, %v1539_v29 }
 0x24d   :  { %v1063_v49 = vpack.c.bf16 %v1527_v5, %v1541_v7  ;;  %v1995_v36 = vpop.eup %1542  ;;  %v963_v39 = vadd.f32 %v962_v44, %v1827_v54  ;;  %v949_v44 = vadd.f32 %v1973_v6, %v1831_v56 }
 0x24e   :  { %v964_v53 = vpop.f32.mrf.mxu1  ;;  %1108 = vmatpush1.bf16.xpose.msra.mxu0 %v1064_v52 }
 0x24f   :  { %1109 = vmatprep.subr.bf16.mxu0 %v1063_v49  ;;  %v965_v38 = vadd.f32 %v964_v53, %v1831_v56  ;;  %v955_v49 = vadd.f32 %v1979_v9, %v1831_v56  ;;  %v953_v9 = vadd.f32 %v1977_v2, %v1827_v54 }
 0x250   :  { %v1997_v55 = vpop.eup %1544  ;;  %v966_v59 = vpop.f32.mrf.mxu1 }
 0x251   :  { %v1078_v61 = vpack.c.bf16 %v1997_v55, %v1995_v36  ;;  %v967_v17 = vadd.f32 %v966_v59, %v1827_v54 }
 0x252   :  { %v968_v3 = vpop.f32.mrf.mxu1 }
 0x253   :  { %v969_v33 = vadd.f32 %v968_v3, %v1831_v56 }
 0x254   :  { %v972_v1 = vpop.f32.mrf.mxu1 }
 0x256   :  { %v974_v46 = vpop.f32.mrf.mxu1  ;;  %1110 = vmatpush1.bf16.xpose.msra.mxu0 %v1062_v50 }
 0x257   :  { %1111 = vmatprep.subr.bf16.mxu0 %v1061_v45  ;;  %v975_v0 = vadd.f32 %v974_v46, %v1831_v56  ;;  %v945_v46 = vadd.f32 %v1960_v57, %v1831_v56 }
 0x258   :  { %v976_v5 = vpop.f32.mrf.mxu1 }
 0x259   :  { %v977_v30 = vadd.f32 %v976_v5, %v1827_v54 }
 0x25a   :  { %v978_v37 = vpop.f32.mrf.mxu1 }
 0x25b   :  { %v979_v29 = vadd.f32 %v978_v37, %v1831_v56 }
 0x25c   :  { %v982_v8 = vpop.f32.mrf.mxu1 }
 0x25d   :  { %1546 = vtanh.f32 %v979_v29  ;;  %v983_v43 = vadd.f32 %v982_v8, %v1827_v54 }
 0x25e   :  { %v984_v7 = vpop.f32.mrf.mxu1  ;;  %1112 = vmatpush1.bf16.xpose.msra.mxu0 %v1060_v42 }
 0x25f   :  { %v985_v52 = vadd.f32 %v984_v7, %v1831_v56  ;;  %1113 = vmatprep.subr.bf16.mxu0 %v1059_v35  ;;  %v973_v35 = vadd.f32 %v972_v1, %v1827_v54 }
 0x260   :  { %v986_v48 = vpop.f32.mrf.mxu1 }
 0x261   :  { %v987_v41 = vadd.f32 %v986_v48, %v1827_v54  ;;  %1548 = vtanh.f32 %v985_v52 }
 0x262   :  { %v988_v45 = vpop.f32.mrf.mxu1 }
 0x263   :  { %v989_v50 = vadd.f32 %v988_v45, %v1831_v56  ;;  %1550 = vtanh.f32 %v987_v41 }
 0x265   :  { %1552 = vtanh.f32 %v989_v50 }
 0x266   :  { %1554 = vtanh.f32 %v983_v43  ;;  %1114 = vmatpush1.bf16.xpose.msra.mxu0 %v1058_v32 }
 0x267   :  { %1556 = vtanh.f32 %v975_v0  ;;  %1115 = vmatprep.subr.bf16.mxu0 %v1057_v23  ;;  %v959_v23 = vadd.f32 %v958_v25, %v1831_v56 }
 0x268   :  { %1558 = vtanh.f32 %v977_v30 }
 0x269   :  { %1560 = vtanh.f32 %v969_v33 }
 0x26a   :  { %1562 = vtanh.f32 %v973_v35  ;;  %v1547_v27 = vpop.eup %1546 }
 0x26b   :  { %1564 = vtanh.f32 %v965_v38 }
 0x26c   :  { %1566 = vtanh.f32 %v967_v17 }
 0x26d   :  { %1568 = vtanh.f32 %v959_v23 }
 0x26e   :  { %1116 = vmatpush1.bf16.xpose.msra.mxu0 %v1056_v19  ;;  %v1549_v28 = vpop.eup %1548  ;;  %1570 = vtanh.f32 %v963_v39  ;;  %v957_v19 = vadd.f32 %v1985_v12, %v1827_v54 }
 0x26f   :  { %1572 = vtanh.f32 %v955_v49 }
 0x270   :  { %v1551_v20 = vpop.eup %1550  ;;  %1574 = vtanh.f32 %v957_v19 }
 0x271   :  { %1576 = vtanh.f32 %v949_v44 }
 0x272   :  { %v1553_v32 = vpop.eup %1552  ;;  %1578 = vtanh.f32 %v953_v9 }
 0x273   :  { %v1555_v42 = vpop.eup %1554  ;;  %v1087_v53 = vpack.c.bf16 %v1553_v32, %v1549_v28  ;;  %1580 = vtanh.f32 %v945_v46 }
 0x274   :  { %v1557_v3 = vpop.eup %1556  ;;  %v1086_v13 = vpack.c.bf16 %v1551_v20, %v1555_v42 }
 0x275   :  { %1117 = vmatprep.subr.bf16.mxu0 %v1087_v53  ;;  %v1085_v14 = vpack.c.bf16 %v1547_v27, %v1557_v3  ;;  %v1559_v25 = vpop.eup %1558 }
 0x276   :  { %1118 = vmatpush2.bf16.xpose.msra.mxu0 %v1086_v13  ;;  %v1561_v59 = vpop.eup %1560 }
 0x277   :  { %1119 = vmatprep.subr.bf16.mxu0 %v1085_v14  ;;  %v1563_v1 = vpop.eup %1562 }
 0x278   :  { %v1565_v5 = vpop.eup %1564  ;;  %v1084_v37 = vpack.c.bf16 %v1559_v25, %v1563_v1 }
 0x279   :  { %v1083_v8 = vpack.c.bf16 %v1561_v59, %v1565_v5  ;;  %v1567_v12 = vpop.eup %1566 }
 0x27a   :  { %v1569_v29 = vpop.eup %1568 }
 0x27b   :  { %v1571_v6 = vpop.eup %1570 }
 0x27c   :  { %v1573_v7 = vpop.eup %1572  ;;  %v1082_v52 = vpack.c.bf16 %v1567_v12, %v1571_v6 }
 0x27d   :  { %v1081_v48 = vpack.c.bf16 %v1569_v29, %v1573_v7  ;;  %v1575_v54 = vpop.eup %1574 }
 0x27e   :  { %1120 = vmatpush2.bf16.xpose.msra.mxu0 %v1084_v37  ;;  %v1577_v2 = vpop.eup %1576 }
 0x27f   :  { %1121 = vmatprep.subr.bf16.mxu0 %v1083_v8  ;;  %v1579_v56 = vpop.eup %1578 }
 0x280   :  { %v1581_v57 = vpop.eup %1580  ;;  %v1080_v41 = vpack.c.bf16 %v1575_v54, %v1579_v56 }
 0x281   :  { %v1079_v43 = vpack.c.bf16 %v1577_v2, %v1581_v57 }
 0x286   :  { %1122 = vmatpush2.bf16.xpose.msra.mxu0 %v1082_v52 }
 0x287   :  { %1123 = vmatprep.subr.bf16.mxu0 %v1081_v48 }
 0x28e   :  { %1124 = vmatpush2.bf16.xpose.msra.mxu0 %v1080_v41 }
 0x28f   :  { %1125 = vmatprep.subr.bf16.mxu0 %v1079_v43 }
 0x296   :  { %1126 = vmatpush2.bf16.xpose.msra.mxu0 %v1078_v61 }
 0x297   :  { %1127 = vmatprep.subr.bf16.mxu0 %v1077_v31 }
 0x29d   :  { %v1092_v40 = vpop.permute.xlu0 %1091 }
 0x29e   :  { %1128 = vmatpush2.bf16.xpose.msra.mxu0 %v1076_v22 }
 0x29f   :  { %1129 = vmatprep.subr.bf16.mxu0 %v1075_v4 }
 0x2a6   :  { %1130 = vmatpush2.bf16.xpose.msra.mxu0 %v1074_v62 }
 0x2a7   :  { %1131 = vmatprep.subr.bf16.mxu0 %v1073_v47 }
 0x2ae   :  { %1132 = vmatpush2.bf16.xpose.msra.mxu0 %v1072_v18 }
 0x2b5   :  { %1134 = vmatmul.mubr.bf16.vlgmr.msra.gmra.mxu0 %v1224_v10 }
 0x375   :  { %v1135_v16 = vpop.f32.mrf.mxu0 }
 0x376   :  { %v1136_v60 = vadd.f32 %v1135_v16, %v1092_v40 }
 0x377   :  { %v1137_v63 = vpop.f32.mrf.mxu0 }
 0x378   :  { %1142 = vst [vmem:[#allocation8] sm:$0xff] %v1136_v60  ;;  %v1138_v26 = vadd.f32 %v1137_v63, %v1092_v40 }
 0x379   :  { %v1139_v58 = vpop.f32.mrf.mxu0 }
 0x37a   :  { %1143 = vst [vmem:[#allocation8 + $0x8] sm:$0xff] %v1138_v26 }
 0x37b   :  { %v1140_v15 = vpop.f32.mrf.mxu0 }
 0x37c   :  { %1653 = shalt.err (!%p1650_p5)
}
 0x37d   :  { %1153 = dma.vmem_to_hbm [thread:$0]  %s1151_s22, 256, %s2078_s7, [#allocation4]  }
 0x37e   :  { %1666 = dma.done.wait [#allocation4], 256  }
 0x37f   :  { %1667 = vsyncadd [#allocation4], 4294967040 }
 0x380   :  { %1157 = vsyncpa [#allocation3], 1 }
 0x381   :  { %1158 = vsyncpa [#allocation6], 1 }
 0x382   :  { %1159 = vsyncpa [#allocation4], 1 }

</bundles_post_ra>
